<compile_context>
chip_gen: v5e
topology: v5e:2x2
jax: 0.10.0
libtpu: 0.0.40
codegen_flags: <defaults>
</compile_context>

<pallas_src>
import jax
import jax.numpy as jnp
from jax.experimental import pallas as pl
from jax.experimental.pallas import tpu as pltpu

LANE = 128
SUBLANE = 8


def _round_up(x, m):
    return ((x + m - 1) // m) * m


def vae_decoder_kernel(z_ref, w_ref, b_ref, out_ref):
    # One fused (tb, K) @ (K, Npad) MXU matmul + f32 bias + sigmoid per grid step.
    z = z_ref[...].astype(jnp.bfloat16)                       # bf16 into the MXU
    logits = jnp.dot(z, w_ref[...], preferred_element_type=jnp.float32)
    logits = logits + b_ref[...]                              # f32 bias add
    out_ref[...] = jax.nn.sigmoid(logits).astype(out_ref.dtype)


def fold_decoder_params(w1, b1, w2, b2, w3, b3):
    """Collapse the activation-free Linear chain into one affine map (f32 fold),
    zero-pad the output feature dim to a multiple of 128, cast W to bf16."""
    w = w1 @ w2 @ w3                       # (K, N) f32
    b = (b1 @ w2 + b2) @ w3 + b3           # (1, N) f32
    n = w.shape[1]
    n_pad = _round_up(n, LANE)
    w = jnp.pad(w, ((0, 0), (0, n_pad - n))).astype(jnp.bfloat16)
    b = jnp.pad(b, ((0, 0), (0, n_pad - n))).astype(jnp.float32)
    return w, b, n


def vae_decoder_folded(z, w_folded, b_folded, out_dim):
    """Run the fused decoder kernel on pre-folded (bf16 W, f32 b) parameters."""
    B, K = z.shape
    n_pad = w_folded.shape[1]

    # Batch tiling: sublane-aligned row blocks, weights resident across steps.
    bb = min(256, _round_up(B, SUBLANE))
    b_pad = _round_up(B, bb)
    if b_pad != B:
        z = jnp.pad(z, ((0, b_pad - B), (0, 0)))
    grid = (b_pad // bb,)

    out = pl.pallas_call(
        vae_decoder_kernel,
        out_shape=jax.ShapeDtypeStruct((b_pad, n_pad), jnp.float32),
        grid=grid,
        in_specs=[
            pl.BlockSpec((bb, K), lambda i: (i, 0)),        # activations
            pl.BlockSpec((K, n_pad), lambda i: (0, 0)),     # resident weights
            pl.BlockSpec((1, n_pad), lambda i: (0, 0)),     # resident bias
        ],
        out_specs=pl.BlockSpec((bb, n_pad), lambda i: (i, 0)),
        compiler_params=pltpu.CompilerParams(
            dimension_semantics=("parallel",),
            vmem_limit_bytes=8 << 20,
        ),
    )(z, w_folded, b_folded)
    return out[:B, :out_dim]


def vae_decoder(z, w1, b1, w2, b2, w3, b3):
    """Full VAEDecoder forward: fold params, then the fused Pallas kernel."""
    w, b, n = fold_decoder_params(w1, b1, w2, b2, w3, b3)
    return vae_decoder_folded(z, w, b, n)


def init_linear_params(key, in_features, out_features):
    """Deterministic init mimicking nn.Linear default (uniform +/- 1/sqrt(in)).
    Weights stored transposed vs PyTorch: (in_features, out_features)."""
    kw, kb = jax.random.split(key)
    bound = 1.0 / jnp.sqrt(jnp.float32(in_features))
    w = jax.random.uniform(kw, (in_features, out_features), jnp.float32, -bound, bound)
    b = jax.random.uniform(kb, (1, out_features), jnp.float32, -bound, bound)
    return w, b


def reference_decoder(z, w1, b1, w2, b2, w3, b3):
    h1 = z @ w1 + b1
    h2 = h1 @ w2 + b2
    h3 = h2 @ w3 + b3
    return jax.nn.sigmoid(h3)


if __name__ == "__main__":
    # args.input_size = 32 (latent dim), args.output_size = (28, 28) -> 784
    batch = 8
    input_size = 32
    output_hw = (28, 28)
    output_size = output_hw[0] * output_hw[1]

    key = jax.random.PRNGKey(0)
    kz, k1, k2, k3 = jax.random.split(key, 4)

    z = jax.random.normal(kz, (batch, input_size), jnp.float32)
    w1, b1 = init_linear_params(k1, input_size, 256)
    w2, b2 = init_linear_params(k2, 256, 512)
    w3, b3 = init_linear_params(k3, 512, output_size)

    # Fold once (parameter-prep), then run the single-matmul kernel.
    w_folded, b_folded, out_dim = fold_decoder_params(w1, b1, w2, b2, w3, b3)
    out = vae_decoder_folded(z, w_folded, b_folded, out_dim)
    out = jax.block_until_ready(out)

    ref = reference_decoder(z, w1, b1, w2, b2, w3, b3)
    assert out.shape == (batch, output_size), out.shape
    # bf16 weights in the fused matmul -> relaxed tolerance vs the f32
    # three-layer reference (sigmoid output; observed max abs err ~1e-3).
    max_err = float(jnp.max(jnp.abs(out - ref)))
    assert jnp.allclose(out, ref, atol=2e-2, rtol=0.0), max_err

    print("KERNEL_OK")
</pallas_src>

<mosaic_0001>
module attributes {stable_mosaic.version = 11 : i64} {
  func.func @vae_decoder_kernel(%arg0: i32, %arg1: memref<8x32xf32, #tpu.memory_space<vmem>>, %arg2: memref<32x896xbf16, #tpu.memory_space<vmem>>, %arg3: memref<1x896xf32, #tpu.memory_space<vmem>>, %arg4: memref<8x896xf32, #tpu.memory_space<vmem>>) attributes {dimension_semantics = [#tpu.dimension_semantics<parallel>], iteration_bounds = array<i64: 1>, scalar_prefetch = 0 : i64, scratch_operands = 0 : i64, tpu.core_type = #tpu.core_type<tc>, window_params = [{transform_indices = @transform_0, window_bounds = array<i64: 8, 32>}, {pipeline_mode = #tpu.pipeline_mode<synchronous>, transform_indices = @transform_1, window_bounds = array<i64: 32, 896>}, {pipeline_mode = #tpu.pipeline_mode<synchronous>, transform_indices = @transform_2, window_bounds = array<i64: 1, 896>}, {transform_indices = @transform_3, window_bounds = array<i64: 8, 896>}]} {
    %c0 = arith.constant 0 : index
    %c0_0 = arith.constant 0 : index
    %0 = vector.load %arg1[%c0, %c0_0] : memref<8x32xf32, #tpu.memory_space<vmem>>, vector<8x32xf32>
    %1 = arith.truncf %0 : vector<8x32xf32> to vector<8x32xbf16>
    %c0_1 = arith.constant 0 : index
    %c0_2 = arith.constant 0 : index
    %2 = vector.load %arg2[%c0_1, %c0_2] : memref<32x896xbf16, #tpu.memory_space<vmem>>, vector<32x896xbf16>
    %cst = arith.constant dense<0.000000e+00> : vector<8x896xf32>
    %3 = tpu.matmul %1, %2, %cst {dimension_numbers = #tpu.dot_dimension_numbers<[1], [0], [0], [1], [0, 0, 1, 1], [], []>} : vector<8x32xbf16>, vector<32x896xbf16>, vector<8x896xf32> -> vector<8x896xf32>
    %c0_3 = arith.constant 0 : index
    %c0_4 = arith.constant 0 : index
    %4 = vector.load %arg3[%c0_3, %c0_4] : memref<1x896xf32, #tpu.memory_space<vmem>>, vector<1x896xf32>
    %5 = vector.broadcast %4 : vector<1x896xf32> to vector<8x896xf32>
    %6 = arith.addf %3, %5 : vector<8x896xf32>
    %7 = arith.negf %6 : vector<8x896xf32>
    %8 = math.exp %7 : vector<8x896xf32>
    %cst_5 = arith.constant 1.000000e+00 : f32
    %9 = vector.broadcast %cst_5 : f32 to vector<8x896xf32>
    %10 = arith.addf %9, %8 : vector<8x896xf32>
    %11 = arith.divf %9, %10 : vector<8x896xf32>
    %c0_6 = arith.constant 0 : index
    %c0_7 = arith.constant 0 : index
    %12 = vector.load %arg4[%c0_6, %c0_7] : memref<8x896xf32, #tpu.memory_space<vmem>>, vector<8x896xf32>
    tpu.vector_store %arg4[%c0_6, %c0_7], %11 {strides = array<i32>} : memref<8x896xf32, #tpu.memory_space<vmem>>, vector<8x896xf32>,
    return
  }
  func.func @transform_0(%arg0: i32) -> (i32, i32) {
    %c0_i32 = arith.constant 0 : i32
    %c0_i32_0 = arith.constant 0 : i32
    return %arg0, %c0_i32 : i32, i32
  }
  func.func @transform_1(%arg0: i32) -> (i32, i32) {
    %c0_i32 = arith.constant 0 : i32
    %c0_i32_0 = arith.constant 0 : i32
    %c0_i32_1 = arith.constant 0 : i32
    return %c0_i32, %c0_i32_0 : i32, i32
  }
  func.func @transform_2(%arg0: i32) -> (i32, i32) {
    %c0_i32 = arith.constant 0 : i32
    %c0_i32_0 = arith.constant 0 : i32
    %c0_i32_1 = arith.constant 0 : i32
    return %c0_i32, %c0_i32_0 : i32, i32
  }
  func.func @transform_3(%arg0: i32) -> (i32, i32) {
    %c0_i32 = arith.constant 0 : i32
    %c0_i32_0 = arith.constant 0 : i32
    return %arg0, %c0_i32 : i32, i32
  }
}

</mosaic_0001>

<bundles_post_ra>
// kernel: tpu_custom_call.1
= control target key start
LH: loop header
LB: loop body
LE: loop exit
PB: predicated region body
PF: predicated region fallthrough
CT: control target
= control target key end

     0   :  { %8 = vsyncpa [#allocation3], 0  ;;  %s722_s0 = inlined_call_operand.hbm [shape: f32[8,32], index: 0, kind: input, shape index: {}]   ;;  %s723_s1 = inlined_call_operand.hbm [shape: bf16[32,896], index: 1, kind: input, shape index: {}]   ;;  %s724_s2 = inlined_call_operand.hbm [shape: f32[1,896], index: 2, kind: input, shape index: {}]   ;;  %s725_s3 = inlined_call_operand.hbm [shape: f32[8,896], index: 3, kind: output, shape index: {}]  }
   0x1   :  { %9 = vsyncpa [#allocation6], 0  ;;  %s26_s14 = sshll.u32 %s723_s1, 4  ;;  %s27_s14 = int_to_ptr.hbm [resolvable:$true] %s26_s14 }
   0x2   :  { %10 = vsyncpa [#allocation4], 0  ;;  %s638_s15 = smov [#allocation5]   ;;  %s16_s19 = sshll.u32 %s722_s0, 4  ;;  %s17_s19 = int_to_ptr.hbm [resolvable:$true] %s16_s19 }
   0x3   :  { %s28_s16 = sshll.u32 %s638_s15, 4  ;;  %s639_s20 = smov 448   ;;  %s29_s16 = int_to_ptr.vmem [resolvable:$true] %s28_s16 }
   0x4   :  { %s640_s21 = smov 28   ;;  %s641_s22 = smov [#allocation2]  }
   0x5   :  { %34 = dma.hbm_to_vmem [thread:$0]  %s27_s14, 1792, %s29_s16, [#allocation6], %s639_s20, %s639_s20, %s640_s21  }
   0x6   :  { %s18_s23 = sshll.u32 %s641_s22, 4  ;;  %s40_s26 = sshll.u32 %s724_s2, 4  ;;  %s19_s23 = int_to_ptr.vmem [resolvable:$true] %s18_s23  ;;  %s41_s26 = int_to_ptr.hbm [resolvable:$true] %s40_s26 }
   0x7   :  { %21 = dma.hbm_to_vmem [thread:$0]  %s17_s19, 128, %s19_s23, [#allocation3]  }
   0x8   :  { %s642_s1 = smov [#allocation7]  }
   0x9   :  { %s42_s27 = sshll.u32 %s642_s1, 4  ;;  %s43_s27 = int_to_ptr.vmem [resolvable:$true] %s42_s27 }
   0xa   :  { %45 = dma.hbm_to_vmem [thread:$0]  %s41_s26, 112, %s43_s27, [#allocation6]  }
   0xb   :  { %632 = dma.done.wait [#allocation3], 128  }
   0xc   :  { %633 = vsyncadd [#allocation3], 4294967168 }
   0xd   :  { %634 = dma.done.wait [#allocation6], 1904  }
   0xe   :  { %635 = vsyncadd [#allocation6], 4294965392  ;;  %v448_v0 = vld [vmem:[#allocation5 + $0x38] sm:$0xf]  ;;  %v498_v1 = vld [vmem:[#allocation5 + $0x50] sm:$0xf0] }
   0xf   :  { %v495_v2 = vld [vmem:[#allocation5 + $0x3c] sm:$0xf]  ;;  %v449_v3 = vor.u32 %v498_v1, %v448_v0  ;;  %v450_v4 = vld [vmem:[#allocation5 + $0x54] sm:$0xf0]  ;;  %v456_v5 = vld [vmem:[#allocation5 + $0x40] sm:$0xf] }
  0x10   :  { %v499_v6 = vld [vmem:[#allocation5 + $0x58] sm:$0xf0]  ;;  %v453_v7 = vor.u32 %v495_v2, %v450_v4  ;;  %v496_v9 = vld [vmem:[#allocation5 + $0x44] sm:$0xf]  ;;  %v458_v10 = vld [vmem:[#allocation5 + $0x5c] sm:$0xf0] }
  0x11   :  { %v457_v8 = vor.u32 %v499_v6, %v456_v5  ;;  %v420_v11 = vld [vmem:[#allocation5] sm:$0xf]  ;;  %175 = vmatpush.bf16.msra.mxu0 %v449_v3  ;;  %v461_v12 = vor.u32 %v496_v9, %v458_v10  ;;  %v491_v13 = vld [vmem:[#allocation5 + $0x18] sm:$0xf0]  ;;  %v488_v14 = vld [vmem:[#allocation5 + $0x4] sm:$0xf] }
  0x12   :  { %v422_v15 = vld [vmem:[#allocation5 + $0x1c] sm:$0xf0]  ;;  %188 = vmatpush.bf16.msra.mxu1 %v453_v7  ;;  %v421_v16 = vor.u32 %v491_v13, %v420_v11  ;;  %v428_v18 = vld [vmem:[#allocation5 + $0x8] sm:$0xf]  ;;  %v492_v19 = vld [vmem:[#allocation5 + $0x20] sm:$0xf0] }
  0x13   :  { %201 = vmatpush.bf16.msra.mxu2 %v457_v8  ;;  %v425_v17 = vor.u32 %v488_v14, %v422_v15  ;;  %v59_v20 = vld [vmem:[#allocation2] sm:$0xff]  ;;  %vm165_vm0 = vcmask 261120   ;;  %214 = vmatpush.bf16.msra.mxu3 %v461_v12  ;;  %v429_v21 = vor.u32 %v492_v19, %v428_v18  ;;  %v489_v22 = vld [vmem:[#allocation5 + $0xc] sm:$0xf]  ;;  %v430_v23 = vld [vmem:[#allocation5 + $0x24] sm:$0xf0] }
  0x14   :  { %v472_v24 = vld [vmem:[#allocation5 + $0x50] sm:$0xf]  ;;  %v60_v25 = vpack.c.bf16 %v59_v20, %v59_v20  ;;  %v433_v26 = vor.u32 %v489_v22, %v430_v23  ;;  %v501_v27 = vld [vmem:[#allocation5 + $0x68] sm:$0xf0]  ;;  %v464_v28 = vld [vmem:[#allocation5 + $0x48] sm:$0xf] }
  0x15   :  { %v500_v29 = vld [vmem:[#allocation5 + $0x60] sm:$0xf0]  ;;  %176 = vmatpush.bf16.msra.mxu0 %v421_v16  ;;  %v473_v30 = vor.u32 %v501_v27, %v472_v24  ;;  %v497_v31 = vld [vmem:[#allocation5 + $0x4c] sm:$0xf]  ;;  %v466_v32 = vld [vmem:[#allocation5 + $0x64] sm:$0xf0] }
  0x16   :  { %v444_v33 = vld [vmem:[#allocation5 + $0x18] sm:$0xf]  ;;  %189 = vmatpush.bf16.msra.mxu1 %v425_v17  ;;  %v465_v34 = vor.u32 %v500_v29, %v464_v28  ;;  %v469_v35 = vor.u32 %v497_v31, %v466_v32  ;;  %v494_v36 = vld [vmem:[#allocation5 + $0x30] sm:$0xf0]  ;;  %v436_v37 = vld [vmem:[#allocation5 + $0x10] sm:$0xf] }
  0x17   :  { %202 = vmatpush.bf16.msra.mxu2 %v429_v21  ;;  %215 = vmatpush.bf16.msra.mxu3 %v433_v26  ;;  %v445_v38 = vor.u32 %v494_v36, %v444_v33  ;;  %v493_v39 = vld [vmem:[#allocation5 + $0x28] sm:$0xf0]  ;;  %v490_v40 = vld [vmem:[#allocation5 + $0x14] sm:$0xf]  ;;  %v438_v41 = vld [vmem:[#allocation5 + $0x2c] sm:$0xf0] }
  0x18   :  { %474 = vmatmul.msk.bf16.vlgmr.msra.gmra.mxu0 %vm165_vm0, %v60_v25  ;;  %v441_v42 = vor.u32 %v490_v40, %v438_v41  ;;  %v437_v43 = vor.u32 %v493_v39, %v436_v37  ;;  %v680_v44 = vld [vmem:[#allocation7] sm:$0xff]  ;;  %s643_s0 = smov [#allocation8]   ;;  %s407_s30 = sshll.u32 %s725_s3, 4  ;;  %s408_s30 = int_to_ptr.hbm [resolvable:$true] %s407_s30 }
  0x19   :  { %475 = vmatmul.msk.bf16.vlgmr.msra.gmra.mxu1 %vm165_vm0, %v60_v25  ;;  %227 = vmatpush.bf16.msrb.mxu0 %v465_v34  ;;  %v79_v45 = vperm.slane %v680_v44, 0  ;;  %v80_v46 = vperm.slane %v680_v44, 1  ;;  %v81_v53 = vperm.slane %v680_v44, 2  ;;  %v82_v54 = vperm.slane %v680_v44, 3  ;;  %s405_s2 = sshll.u32 %s643_s0, 4  ;;  %s406_s2 = int_to_ptr.vmem [resolvable:$true] %s405_s2 }
  0x1a   :  { %240 = vmatpush.bf16.msrb.mxu1 %v469_v35  ;;  %476 = vmatmul.msk.bf16.vlgmr.msra.gmra.mxu2 %vm165_vm0, %v60_v25  ;;  %v83_v3 = vperm.slane %v680_v44, 4  ;;  %v84_v4 = vperm.slane %v680_v44, 5  ;;  %v85_v19 = vperm.slane %v680_v44, 6 }
  0x1b   :  { %253 = vmatpush.bf16.msrb.mxu2 %v473_v30  ;;  %477 = vmatmul.msk.bf16.vlgmr.msra.gmra.mxu3 %vm165_vm0, %v60_v25 }
  0x1d   :  { %228 = vmatpush.bf16.msrb.mxu0 %v437_v43 }
  0x1e   :  { %241 = vmatpush.bf16.msrb.mxu1 %v441_v42 }
  0x1f   :  { %254 = vmatpush.bf16.msrb.mxu2 %v445_v38 }
  0x28   :  { %478 = vmatmul.msk.bf16.vlgmr.msrb.gmra.mxu0 %vm165_vm0, %v60_v25 }
  0x29   :  { %479 = vmatmul.msk.bf16.vlgmr.msrb.gmra.mxu1 %vm165_vm0, %v60_v25 }
  0x2a   :  { %480 = vmatmul.msk.bf16.vlgmr.msrb.gmra.mxu2 %vm165_vm0, %v60_v25 }
  0x95   :  { %v178_v47 = vpop.f32.mrf.mxu0 }
  0x96   :  { %v179_v48 = vadd.f32 %v178_v47, %v79_v45  ;;  %v191_v49 = vpop.f32.mrf.mxu1 }
  0x97   :  { %v192_v50 = vadd.f32 %v191_v49, %v80_v46 }
  0x98   :  { %v481_v51 = vmul.f32 -1.442695, %v179_v48 }
  0x99   :  { %v482_v52 = vmul.f32 -1.442695, %v192_v50 }
  0x9a   :  { %508 = vpow2.f32 %v481_v51 }
  0x9b   :  { %510 = vpow2.f32 %v482_v52 }
  0x9d   :  { %v204_v55 = vpop.f32.mrf.mxu2  ;;  %v180_v57 = vpop.f32.mrf.mxu0 }
  0x9e   :  { %v205_v56 = vadd.f32 %v204_v55, %v81_v53  ;;  %v217_v58 = vpop.f32.mrf.mxu3  ;;  %v193_v59 = vpop.f32.mrf.mxu1 }
  0x9f   :  { %v218_v60 = vadd.f32 %v217_v58, %v82_v54 }
  0xa0   :  { %v483_v61 = vmul.f32 -1.442695, %v205_v56  ;;  %v509_v62 = vpop.eup %508 }
  0xa1   :  { %v484_v63 = vmul.f32 -1.442695, %v218_v60  ;;  %v511_v0 = vpop.eup %510  ;;  %v281_v1 = vadd.f32 1.0, %v509_v62 }
  0xa2   :  { %512 = vpow2.f32 %v483_v61  ;;  %v282_v2 = vadd.f32 1.0, %v511_v0 }
  0xa3   :  { %514 = vpow2.f32 %v484_v63  ;;  %v297_v20 = vand.u32 2147483647, %v281_v1  ;;  %v299_v24 = vand.u32 2147483648, %v281_v1  ;;  %vm293_vm1 = vweird.f32 %v281_v1 }
  0xa4   :  { %516 = vrcp.f32 %v281_v1  ;;  %v312_v25 = vand.u32 2147483647, %v282_v2  ;;  %vm308_vm2 = vweird.f32 %v282_v2  ;;  %v314_v28 = vand.u32 2147483648, %v282_v2 }
  0xa5   :  { %518 = vrcp.f32 %v282_v2  ;;  %v206_v5 = vpop.f32.mrf.mxu2  ;;  %v230_v6 = vpop.f32.mrf.mxu0  ;;  %vm695_vm4 = vcmp.eq.f32.partialorder %v297_v20, 8.507059e+37  ;;  %v300_v37 = vor.u32 1.1754944e-38, %v299_v24 }
  0xa6   :  { %v219_v7 = vpop.f32.mrf.mxu3  ;;  %v231_v8 = vadd.f32 %v230_v6, %v83_v3  ;;  %v243_v9 = vpop.f32.mrf.mxu1  ;;  %vm699_vm6 = vcmp.eq.f32.partialorder %v312_v25, 8.507059e+37  ;;  %v315_v41 = vor.u32 1.1754944e-38, %v314_v28 }
  0xa7   :  { %v244_v11 = vadd.f32 %v243_v9, %v84_v4 }
  0xa8   :  { %v513_v10 = vpop.eup %512  ;;  %v485_v18 = vmul.f32 -1.442695, %v231_v8 }
  0xa9   :  { %v515_v12 = vpop.eup %514  ;;  %v688_v13 = vadd.f32 1.0, %v513_v10  ;;  %v486_v22 = vmul.f32 -1.442695, %v244_v11 }
  0xaa   :  { %v517_v14 = vpop.eup %516  ;;  %v690_v15 = vadd.f32 1.0, %v515_v12 }
  0xab   :  { %v519_v16 = vpop.eup %518  ;;  %v289_v17 = vmul.f32 %v517_v14, %v281_v1  ;;  %520 = vrcp.f32 %v688_v13  ;;  %vm294_vm3 = vweird.f32 %v517_v14  ;;  %v327_v43 = vand.u32 2147483647, %v688_v13 }
  0xac   :  { %v304_v21 = vmul.f32 %v519_v16, %v282_v2  ;;  %522 = vrcp.f32 %v690_v15  ;;  %vm309_vm5 = vweird.f32 %v519_v16  ;;  %vm295_vm7 = vmor %vm293_vm1, %vm294_vm3  ;;  %v329_v46 = vand.u32 2147483648, %v688_v13 }
  0xad   :  { %v290_v23 = vsub.f32 1.0, %v289_v17  ;;  %v256_v26 = vpop.f32.mrf.mxu2  ;;  %v232_v29 = vpop.f32.mrf.mxu0  ;;  %524 = vpow2.f32 %v485_v18  ;;  %vm310_vm8 = vmor %vm308_vm2, %vm309_vm5  ;;  %vm338_vm9 = vweird.f32 %v690_v15  ;;  %v342_v53 = vand.u32 2147483647, %v690_v15 }
  0xae   :  { %v305_v27 = vsub.f32 1.0, %v304_v21  ;;  %v257_v31 = vadd.f32 %v256_v26, %v85_v19  ;;  %v245_v32 = vpop.f32.mrf.mxu1  ;;  %526 = vpow2.f32 %v486_v22  ;;  %v344_v54 = vand.u32 2147483648, %v690_v15 }
  0xaf   :  { %v291_v30 = vmul.f32 %v517_v14, %v290_v23  ;;  %vm323_vm12 = vweird.f32 %v688_v13  ;;  %v330_v0 = vor.u32 1.1754944e-38, %v329_v46  ;;  %vm328_vm15 = vcmp.eq.f32.partialorder %v327_v43, 8.507059e+37 }
  0xb0   :  { %v306_v34 = vmul.f32 %v519_v16, %v305_v27  ;;  %v487_v39 = vmul.f32 -1.442695, %v257_v31  ;;  %v345_v1 = vor.u32 1.1754944e-38, %v344_v54  ;;  %vm343_vm0 = vcmp.eq.f32.partialorder %v342_v53, 8.507059e+37 }
  0xb1   :  { %v521_v35 = vpop.eup %520  ;;  %v292_v36 = vadd.f32 %v517_v14, %v291_v30 }
  0xb2   :  { %v307_v40 = vadd.f32 %v519_v16, %v306_v34  ;;  %v319_v42 = vmul.f32 %v521_v35, %v688_v13  ;;  %v523_v44 = vpop.eup %522  ;;  %528 = vpow2.f32 %v487_v39  ;;  %vm324_vm10 = vweird.f32 %v521_v35 }
  0xb3   :  { %v296_v45 = vsel %vm295_vm7, %v517_v14, %v292_v36  ;;  %v334_v50 = vmul.f32 %v523_v44, %v690_v15  ;;  %v525_v51 = vpop.eup %524  ;;  %vm339_vm11 = vweird.f32 %v523_v44  ;;  %vm325_vm13 = vmor %vm323_vm12, %vm324_vm10 }
  0xb4   :  { %v301_v47 = vsel %vm695_vm4, %v300_v37, %v296_v45  ;;  %v311_v48 = vsel %vm310_vm8, %v519_v16, %v307_v40  ;;  %v320_v49 = vsub.f32 1.0, %v319_v42  ;;  %v527_v56 = vpop.eup %526  ;;  %v285_v59 = vadd.f32 1.0, %v525_v51  ;;  %vm340_vm14 = vmor %vm338_vm9, %vm339_vm11 }
  0xb5   :  { %393 = vst [vmem:[#allocation8] sm:$0xff] %v301_v47  ;;  %v316_v52 = vsel %vm699_vm6, %v315_v41, %v311_v48  ;;  %v258_v55 = vpop.f32.mrf.mxu2  ;;  %v335_v58 = vsub.f32 1.0, %v334_v50  ;;  %v286_v60 = vadd.f32 1.0, %v527_v56 }
  0xb6   :  { %394 = vst [vmem:[#allocation8 + $0x8] sm:$0xff] %v316_v52  ;;  %v321_v57 = vmul.f32 %v521_v35, %v320_v49  ;;  %530 = vrcp.f32 %v285_v59  ;;  %v357_v13 = vand.u32 2147483647, %v285_v59  ;;  %v359_v14 = vand.u32 2147483648, %v285_v59 }
  0xb7   :  { %v336_v62 = vmul.f32 %v523_v44, %v335_v58  ;;  %532 = vrcp.f32 %v286_v60  ;;  %v372_v16 = vand.u32 2147483647, %v286_v60  ;;  %vm353_vm1 = vweird.f32 %v285_v59 }
  0xb8   :  { %v322_v61 = vadd.f32 %v521_v35, %v321_v57  ;;  %v529_v63 = vpop.eup %528  ;;  %v374_v19 = vand.u32 2147483648, %v286_v60  ;;  %vm368_vm3 = vweird.f32 %v286_v60  ;;  %vm358_vm5 = vcmp.eq.f32.partialorder %v357_v13, 8.507059e+37 }
  0xb9   :  { %v337_v3 = vadd.f32 %v523_v44, %v336_v62  ;;  %v287_v5 = vadd.f32 1.0, %v529_v63  ;;  %v360_v23 = vor.u32 1.1754944e-38, %v359_v14  ;;  %vm373_vm7 = vcmp.eq.f32.partialorder %v372_v16, 8.507059e+37 }
  0xba   :  { %v326_v2 = vsel %vm325_vm13, %v521_v35, %v322_v61  ;;  %v375_v27 = vor.u32 1.1754944e-38, %v374_v19 }
  0xbb   :  { %v331_v4 = vsel %vm328_vm15, %v330_v0, %v326_v2  ;;  %v341_v6 = vsel %vm340_vm14, %v523_v44, %v337_v3  ;;  %534 = vrcp.f32 %v287_v5  ;;  %v387_v28 = vand.u32 2147483647, %v287_v5 }
  0xbc   :  { %395 = vst [vmem:[#allocation8 + $0x10] sm:$0xff] %v331_v4  ;;  %v346_v7 = vsel %vm343_vm0, %v345_v1, %v341_v6  ;;  %v531_v8 = vpop.eup %530  ;;  %v389_v29 = vand.u32 2147483648, %v287_v5  ;;  %vm383_vm10 = vweird.f32 %v287_v5 }
  0xbd   :  { %396 = vst [vmem:[#allocation8 + $0x18] sm:$0xff] %v346_v7  ;;  %v533_v9 = vpop.eup %532  ;;  %v349_v10 = vmul.f32 %v531_v8, %v285_v59  ;;  %vm354_vm2 = vweird.f32 %v531_v8  ;;  %vm388_vm12 = vcmp.eq.f32.partialorder %v387_v28, 8.507059e+37 }
  0xbe   :  { %v364_v11 = vmul.f32 %v533_v9, %v286_v60  ;;  %vm369_vm4 = vweird.f32 %v533_v9  ;;  %vm355_vm6 = vmor %vm353_vm1, %vm354_vm2  ;;  %v390_v35 = vor.u32 1.1754944e-38, %v389_v29 }
  0xbf   :  { %v350_v12 = vsub.f32 1.0, %v349_v10  ;;  %vm370_vm8 = vmor %vm368_vm3, %vm369_vm4 }
  0xc0   :  { %v365_v15 = vsub.f32 1.0, %v364_v11 }
  0xc1   :  { %v535_v17 = vpop.eup %534  ;;  %v351_v18 = vmul.f32 %v531_v8, %v350_v12 }
  0xc2   :  { %v366_v20 = vmul.f32 %v533_v9, %v365_v15  ;;  %v379_v21 = vmul.f32 %v535_v17, %v287_v5  ;;  %vm384_vm9 = vweird.f32 %v535_v17 }
  0xc3   :  { %v352_v22 = vadd.f32 %v531_v8, %v351_v18  ;;  %vm385_vm11 = vmor %vm383_vm10, %vm384_vm9 }
  0xc4   :  { %v367_v24 = vadd.f32 %v533_v9, %v366_v20  ;;  %v380_v25 = vsub.f32 1.0, %v379_v21 }
  0xc5   :  { %v356_v26 = vsel %vm355_vm6, %v531_v8, %v352_v22 }
  0xc6   :  { %v361_v30 = vsel %vm358_vm5, %v360_v23, %v356_v26  ;;  %v371_v31 = vsel %vm370_vm8, %v533_v9, %v367_v24  ;;  %v381_v32 = vmul.f32 %v535_v17, %v380_v25 }
  0xc7   :  { %397 = vst [vmem:[#allocation8 + $0x20] sm:$0xff] %v361_v30  ;;  %v376_v33 = vsel %vm373_vm7, %v375_v27, %v371_v31 }
  0xc8   :  { %398 = vst [vmem:[#allocation8 + $0x28] sm:$0xff] %v376_v33  ;;  %v382_v34 = vadd.f32 %v535_v17, %v381_v32 }
  0xca   :  { %v386_v36 = vsel %vm385_vm11, %v535_v17, %v382_v34 }
  0xcb   :  { %v391_v37 = vsel %vm388_vm12, %v390_v35, %v386_v36 }
  0xcc   :  { %399 = vst [vmem:[#allocation8 + $0x30] sm:$0xff] %v391_v37 }
  0xcd   :  { %410 = dma.vmem_to_hbm [thread:$0]  %s406_s2, 896, %s408_s30, [#allocation4]  }
  0xce   :  { %636 = dma.done.wait [#allocation4], 896  }
  0xcf   :  { %637 = vsyncadd [#allocation4], 4294966400 }
  0xd0   :  { %415 = vsyncpa [#allocation3], 1 }
  0xd1   :  { %416 = vsyncpa [#allocation6], 1 }
  0xd2   :  { %417 = vsyncpa [#allocation4], 1 }

</bundles_post_ra>
